<compile_context>
chip_gen: v7x
topology: tpu7x:2x2x1
jax: 0.10.0
libtpu: 0.0.40
codegen_flags: <defaults>
</compile_context>

<pallas_src>
import functools

import jax
import jax.numpy as jnp
import numpy as np
from jax.experimental import pallas as pl
from jax.experimental.pallas import tpu as pltpu

N_BINS = 15
_LANES = 128
# Deterministic "parameters" of the module: bin boundaries (torch.linspace(0, 1, 16)).
_BOUNDS = np.linspace(0.0, 1.0, N_BINS + 1, dtype=np.float32)


def _make_padded_bounds():
    # Lanes >= N_BINS get lo=hi=2.0, which no confidence (<=1.0) can satisfy.
    lowers = np.full((1, _LANES), 2.0, dtype=np.float32)
    uppers = np.full((1, _LANES), 2.0, dtype=np.float32)
    lowers[0, :N_BINS] = _BOUNDS[:-1]
    uppers[0, :N_BINS] = _BOUNDS[1:]
    return lowers, uppers


def _ece_kernel(logits_ref, labels_ref, lowers_ref, uppers_ref, out_ref,
                count_ref, sconf_ref, sacc_ref, *, n_actual, tile_n):
    i = pl.program_id(0)

    @pl.when(i == 0)
    def _():
        count_ref[...] = jnp.zeros_like(count_ref)
        sconf_ref[...] = jnp.zeros_like(sconf_ref)
        sacc_ref[...] = jnp.zeros_like(sacc_ref)

    logits = logits_ref[...]                       # (TN, C) f32
    labels = labels_ref[...]                       # (TN, 1) i32
    tn, c = logits.shape

    # confidence = max softmax prob = exp(0) / sum(exp(logits - rowmax))
    m = jnp.max(logits, axis=1, keepdims=True)
    denom = jnp.sum(jnp.exp(logits - m), axis=1, keepdims=True)
    conf = 1.0 / denom                             # (TN, 1)

    # argmax directly on logits (first maximal index), matches torch.max semantics
    col = jax.lax.broadcasted_iota(jnp.int32, (tn, c), 1)
    is_max = logits >= m
    pred = jnp.min(jnp.where(is_max, col, c), axis=1, keepdims=True)   # (TN, 1)
    acc = (pred == labels).astype(jnp.float32)                         # (TN, 1)

    # mask out rows that only exist because of grid padding
    row = jax.lax.broadcasted_iota(jnp.int32, (tn, 1), 0) + i * tile_n
    valid = row < n_actual                                             # (TN, 1) bool

    # one-pass binning: (TN, 128) one-hot bin membership, exact (lo, hi] semantics
    lowers = lowers_ref[...]                       # (1, 128)
    uppers = uppers_ref[...]                       # (1, 128)
    in_bin = jnp.logical_and(conf > lowers, conf <= uppers)
    in_bin = jnp.logical_and(in_bin, valid)
    in_bin_f = in_bin.astype(jnp.float32)          # (TN, 128)

    count_ref[...] += jnp.sum(in_bin_f, axis=0, keepdims=True)
    sconf_ref[...] += jnp.sum(in_bin_f * conf, axis=0, keepdims=True)
    sacc_ref[...] += jnp.sum(in_bin_f * acc, axis=0, keepdims=True)

    @pl.when(i == pl.num_programs(0) - 1)
    def _():
        count = count_ref[...]                     # (1, 128)
        safe = jnp.maximum(count, 1.0)             # guard 0/0 for empty bins
        avg_conf = sconf_ref[...] / safe
        avg_acc = sacc_ref[...] / safe
        prop = count / jnp.float32(n_actual)
        contrib = jnp.where(count > 0.0,
                            jnp.abs(avg_conf - avg_acc) * prop,
                            0.0)
        out_ref[...] = jnp.sum(contrib, axis=1, keepdims=True)


def _choose_tile_n(n, c, target_bytes=4 * 1024 * 1024):
    """Largest multiple-of-8 row tile with logits tile <= ~4 MiB (v7x-safe when
    double-buffered), capped at 1024 rows and at the (rounded-up) problem size."""
    rows = max(8, (target_bytes // max(c * 4, 1)) // 8 * 8)
    rows = min(rows, 1024)
    n_up = ((n + 7) // 8) * 8
    return int(min(rows, n_up))


@functools.partial(jax.jit, static_argnames=("tile_n",))
def ece_pallas(logits, labels, tile_n=None):
    """logits: (N, C) float, labels: (N,) int -> (1,) float32 ECE."""
    n, c = logits.shape
    logits = logits.astype(jnp.float32)
    labels2d = labels.astype(jnp.int32).reshape(n, 1)

    if tile_n is None:
        tile_n = _choose_tile_n(n, c)
    tile_n = int(tile_n)
    assert tile_n % 8 == 0, "tile_n must be a multiple of 8"

    n_pad = ((n + tile_n - 1) // tile_n) * tile_n
    if n_pad != n:
        logits = jnp.pad(logits, ((0, n_pad - n), (0, 0)))
        labels2d = jnp.pad(labels2d, ((0, n_pad - n), (0, 0)))

    lowers_np, uppers_np = _make_padded_bounds()
    lowers = jnp.asarray(lowers_np)
    uppers = jnp.asarray(uppers_np)

    grid = (n_pad // tile_n,)
    kernel = functools.partial(_ece_kernel, n_actual=n, tile_n=tile_n)

    out = pl.pallas_call(
        kernel,
        out_shape=jax.ShapeDtypeStruct((1, 1), jnp.float32),
        grid_spec=pltpu.PrefetchScalarGridSpec(
            num_scalar_prefetch=0,
            grid=grid,
            in_specs=[
                pl.BlockSpec((tile_n, c), lambda i: (i, 0)),     # logits row tile
                pl.BlockSpec((tile_n, 1), lambda i: (i, 0)),     # labels row tile
                pl.BlockSpec((1, _LANES), lambda i: (0, 0)),     # bin lowers (const)
                pl.BlockSpec((1, _LANES), lambda i: (0, 0)),     # bin uppers (const)
            ],
            out_specs=pl.BlockSpec((1, 1), lambda i: (0, 0)),
            scratch_shapes=[
                pltpu.VMEM((1, _LANES), jnp.float32),            # per-bin count
                pltpu.VMEM((1, _LANES), jnp.float32),            # per-bin sum(conf)
                pltpu.VMEM((1, _LANES), jnp.float32),            # per-bin sum(acc)
            ],
        ),
        compiler_params=pltpu.CompilerParams(
            dimension_semantics=("arbitrary",),
            vmem_limit_bytes=32 * 1024 * 1024,
        ),
        cost_estimate=pl.CostEstimate(
            flops=6 * n * c,
            transcendentals=n * c,
            bytes_accessed=n * c * 4 + n * 4 + 2 * _LANES * 4 + 4,
        ),
    )(logits, labels2d, lowers, uppers)
    return out.reshape(1)


def ece_reference(logits, labels, n_bins=N_BINS):
    """Plain numpy reference mirroring the PyTorch module."""
    logits = np.asarray(logits, dtype=np.float32)
    labels = np.asarray(labels)
    x = logits - logits.max(axis=1, keepdims=True)
    e = np.exp(x)
    probs = e / e.sum(axis=1, keepdims=True)
    conf = probs.max(axis=1)
    pred = probs.argmax(axis=1)
    acc = (pred == labels).astype(np.float32)
    bounds = np.linspace(0.0, 1.0, n_bins + 1, dtype=np.float32)
    ece = 0.0
    for lo, hi in zip(bounds[:-1], bounds[1:]):
        in_bin = (conf > lo) & (conf <= hi)
        prop = in_bin.mean()
        if prop > 0:
            ece += abs(conf[in_bin].mean() - acc[in_bin].mean()) * prop
    return np.array([ece], dtype=np.float32)


if __name__ == "__main__":
    key = jax.random.PRNGKey(0)
    k1, k2, k3, k4 = jax.random.split(key, 4)

    # Case 1: small, single-tile path.
    N1, C1 = 64, 8
    logits1 = jax.random.normal(k1, (N1, C1), dtype=jnp.float32) * 2.0
    labels1 = jax.random.randint(k2, (N1,), 0, C1, dtype=jnp.int32)
    out1 = jax.block_until_ready(ece_pallas(logits1, labels1))
    ref1 = ece_reference(np.asarray(logits1), np.asarray(labels1))
    np.testing.assert_allclose(np.asarray(out1), ref1, rtol=1e-4, atol=1e-5)

    # Case 2: multi-tile grid with a padded remainder tile (exercises the
    # accumulator init/finalize path and the validity mask).
    N2, C2 = 200, 16
    logits2 = jax.random.normal(k3, (N2, C2), dtype=jnp.float32) * 3.0
    labels2 = jax.random.randint(k4, (N2,), 0, C2, dtype=jnp.int32)
    out2 = jax.block_until_ready(ece_pallas(logits2, labels2, tile_n=64))
    ref2 = ece_reference(np.asarray(logits2), np.asarray(labels2))
    np.testing.assert_allclose(np.asarray(out2), ref2, rtol=1e-4, atol=1e-5)

    print("KERNEL_OK")
</pallas_src>

<mosaic_0001>
module attributes {stable_mosaic.version = 11 : i64} {
  func.func @_ece_kernel(%arg0: i32, %arg1: memref<64x8xf32, #tpu.memory_space<vmem>>, %arg2: memref<64x1xi32, #tpu.memory_space<vmem>>, %arg3: memref<1x128xf32, #tpu.memory_space<vmem>>, %arg4: memref<1x128xf32, #tpu.memory_space<vmem>>, %arg5: memref<1x1xf32, #tpu.memory_space<vmem>>, %arg6: memref<1x128xf32, #tpu.memory_space<vmem>>, %arg7: memref<1x128xf32, #tpu.memory_space<vmem>>, %arg8: memref<1x128xf32, #tpu.memory_space<vmem>>) attributes {dimension_semantics = [#tpu.dimension_semantics<arbitrary>], iteration_bounds = array<i64: 1>, scalar_prefetch = 0 : i64, scratch_operands = 3 : i64, tpu.core_type = #tpu.core_type<tc>, window_params = [{transform_indices = @transform_0, window_bounds = array<i64: 64, 8>}, {transform_indices = @transform_1, window_bounds = array<i64: 64, 1>}, {pipeline_mode = #tpu.pipeline_mode<synchronous>, transform_indices = @transform_2, window_bounds = array<i64: 1, 128>}, {pipeline_mode = #tpu.pipeline_mode<synchronous>, transform_indices = @transform_3, window_bounds = array<i64: 1, 128>}, {pipeline_mode = #tpu.pipeline_mode<synchronous>, transform_indices = @transform_4, window_bounds = array<i64: 1, 1>}]} {
    %c0_i32 = arith.constant 0 : i32
    %0 = arith.cmpi eq, %arg0, %c0_i32 : i32
    %1 = arith.extui %0 : i1 to i32
    %c0_i32_0 = arith.constant 0 : i32
    %2 = arith.cmpi ne, %1, %c0_i32_0 : i32
    scf.if %2 {
      %cst_29 = arith.constant 0.000000e+00 : f32
      %65 = vector.broadcast %cst_29 : f32 to vector<1x128xf32>
      %c0_30 = arith.constant 0 : index
      %c0_31 = arith.constant 0 : index
      %66 = vector.load %arg6[%c0_30, %c0_31] : memref<1x128xf32, #tpu.memory_space<vmem>>, vector<1x128xf32>
      tpu.vector_store %arg6[%c0_30, %c0_31], %65 {strides = array<i32>} : memref<1x128xf32, #tpu.memory_space<vmem>>, vector<1x128xf32>,
      %cst_32 = arith.constant 0.000000e+00 : f32
      %67 = vector.broadcast %cst_32 : f32 to vector<1x128xf32>
      %c0_33 = arith.constant 0 : index
      %c0_34 = arith.constant 0 : index
      %68 = vector.load %arg7[%c0_33, %c0_34] : memref<1x128xf32, #tpu.memory_space<vmem>>, vector<1x128xf32>
      tpu.vector_store %arg7[%c0_33, %c0_34], %67 {strides = array<i32>} : memref<1x128xf32, #tpu.memory_space<vmem>>, vector<1x128xf32>,
      %cst_35 = arith.constant 0.000000e+00 : f32
      %69 = vector.broadcast %cst_35 : f32 to vector<1x128xf32>
      %c0_36 = arith.constant 0 : index
      %c0_37 = arith.constant 0 : index
      %70 = vector.load %arg8[%c0_36, %c0_37] : memref<1x128xf32, #tpu.memory_space<vmem>>, vector<1x128xf32>
      tpu.vector_store %arg8[%c0_36, %c0_37], %69 {strides = array<i32>} : memref<1x128xf32, #tpu.memory_space<vmem>>, vector<1x128xf32>,
    } else {
    }
    %c0 = arith.constant 0 : index
    %c0_1 = arith.constant 0 : index
    %3 = vector.load %arg1[%c0, %c0_1] : memref<64x8xf32, #tpu.memory_space<vmem>>, vector<64x8xf32>
    %c0_2 = arith.constant 0 : index
    %c0_3 = arith.constant 0 : index
    %4 = vector.load %arg2[%c0_2, %c0_3] : memref<64x1xi32, #tpu.memory_space<vmem>>, vector<64x1xi32>
    %cst = arith.constant dense<0xFF800000> : vector<64xf32>
    %5 = vector.multi_reduction <maximumf>, %3, %cst [1] : vector<64x8xf32> to vector<64xf32>
    %6 = vector.shape_cast %5 : vector<64xf32> to vector<64x1xf32>
    %7 = vector.broadcast %6 : vector<64x1xf32> to vector<64x8xf32>
    %8 = arith.subf %3, %7 : vector<64x8xf32>
    %9 = math.exp %8 : vector<64x8xf32>
    %cst_4 = arith.constant dense<0.000000e+00> : vector<64xf32>
    %10 = vector.multi_reduction <add>, %9, %cst_4 [1] : vector<64x8xf32> to vector<64xf32>
    %11 = vector.shape_cast %10 : vector<64xf32> to vector<64x1xf32>
    %cst_5 = arith.constant 1.000000e+00 : f32
    %12 = vector.broadcast %cst_5 : f32 to vector<64x1xf32>
    %13 = arith.divf %12, %11 : vector<64x1xf32>
    %14 = tpu.iota {dimensions = array<i32: 1>} : vector<64x8xi32>
    %15 = vector.broadcast %6 : vector<64x1xf32> to vector<64x8xf32>
    %16 = arith.cmpf oge, %3, %15 : vector<64x8xf32>
    %c8_i32 = arith.constant 8 : i32
    %17 = vector.broadcast %c8_i32 : i32 to vector<64x8xi32>
    %18 = arith.select %16, %14, %17 : vector<64x8xi1>, vector<64x8xi32>
    %cst_6 = arith.constant dense<2147483647> : vector<64xi32>
    %19 = vector.multi_reduction <minsi>, %18, %cst_6 [1] : vector<64x8xi32> to vector<64xi32>
    %20 = vector.shape_cast %19 : vector<64xi32> to vector<64x1xi32>
    %21 = arith.cmpi eq, %20, %4 : vector<64x1xi32>
    %22 = arith.extui %21 : vector<64x1xi1> to vector<64x1xi32>
    %23 = arith.sitofp %22 : vector<64x1xi32> to vector<64x1xf32>
    %24 = tpu.iota {dimensions = array<i32: 0>} : vector<64x1xi32>
    %c64_i32 = arith.constant 64 : i32
    %25 = arith.muli %arg0, %c64_i32 : i32
    %26 = vector.broadcast %25 : i32 to vector<64x1xi32>
    %27 = arith.addi %24, %26 : vector<64x1xi32>
    %c64_i32_7 = arith.constant 64 : i32
    %28 = vector.broadcast %c64_i32_7 : i32 to vector<64x1xi32>
    %29 = arith.cmpi slt, %27, %28 : vector<64x1xi32>
    %c0_8 = arith.constant 0 : index
    %c0_9 = arith.constant 0 : index
    %30 = vector.load %arg3[%c0_8, %c0_9] : memref<1x128xf32, #tpu.memory_space<vmem>>, vector<1x128xf32>
    %c0_10 = arith.constant 0 : index
    %c0_11 = arith.constant 0 : index
    %31 = vector.load %arg4[%c0_10, %c0_11] : memref<1x128xf32, #tpu.memory_space<vmem>>, vector<1x128xf32>
    %32 = vector.broadcast %13 : vector<64x1xf32> to vector<64x128xf32>
    %33 = vector.broadcast %30 : vector<1x128xf32> to vector<64x128xf32>
    %34 = arith.cmpf ogt, %32, %33 : vector<64x128xf32>
    %35 = vector.broadcast %13 : vector<64x1xf32> to vector<64x128xf32>
    %36 = vector.broadcast %31 : vector<1x128xf32> to vector<64x128xf32>
    %37 = arith.cmpf ole, %35, %36 : vector<64x128xf32>
    %38 = arith.andi %34, %37 : vector<64x128xi1>
    %39 = vector.broadcast %29 : vector<64x1xi1> to vector<64x128xi1>
    %40 = arith.andi %38, %39 : vector<64x128xi1>
    %41 = arith.extui %40 : vector<64x128xi1> to vector<64x128xi32>
    %42 = arith.sitofp %41 : vector<64x128xi32> to vector<64x128xf32>
    %c0_12 = arith.constant 0 : index
    %c0_13 = arith.constant 0 : index
    %43 = vector.load %arg6[%c0_12, %c0_13] : memref<1x128xf32, #tpu.memory_space<vmem>>, vector<1x128xf32>
    %cst_14 = arith.constant dense<0.000000e+00> : vector<128xf32>
    %44 = vector.multi_reduction <add>, %42, %cst_14 [0] : vector<64x128xf32> to vector<128xf32>
    %45 = vector.shape_cast %44 : vector<128xf32> to vector<1x128xf32>
    %46 = arith.addf %43, %45 : vector<1x128xf32>
    %c0_15 = arith.constant 0 : index
    %c0_16 = arith.constant 0 : index
    %47 = vector.load %arg6[%c0_15, %c0_16] : memref<1x128xf32, #tpu.memory_space<vmem>>, vector<1x128xf32>
    tpu.vector_store %arg6[%c0_15, %c0_16], %46 {strides = array<i32>} : memref<1x128xf32, #tpu.memory_space<vmem>>, vector<1x128xf32>,
    %c0_17 = arith.constant 0 : index
    %c0_18 = arith.constant 0 : index
    %48 = vector.load %arg7[%c0_17, %c0_18] : memref<1x128xf32, #tpu.memory_space<vmem>>, vector<1x128xf32>
    %49 = vector.broadcast %13 : vector<64x1xf32> to vector<64x128xf32>
    %50 = arith.mulf %42, %49 : vector<64x128xf32>
    %cst_19 = arith.constant dense<0.000000e+00> : vector<128xf32>
    %51 = vector.multi_reduction <add>, %50, %cst_19 [0] : vector<64x128xf32> to vector<128xf32>
    %52 = vector.shape_cast %51 : vector<128xf32> to vector<1x128xf32>
    %53 = arith.addf %48, %52 : vector<1x128xf32>
    %c0_20 = arith.constant 0 : index
    %c0_21 = arith.constant 0 : index
    %54 = vector.load %arg7[%c0_20, %c0_21] : memref<1x128xf32, #tpu.memory_space<vmem>>, vector<1x128xf32>
    tpu.vector_store %arg7[%c0_20, %c0_21], %53 {strides = array<i32>} : memref<1x128xf32, #tpu.memory_space<vmem>>, vector<1x128xf32>,
    %c0_22 = arith.constant 0 : index
    %c0_23 = arith.constant 0 : index
    %55 = vector.load %arg8[%c0_22, %c0_23] : memref<1x128xf32, #tpu.memory_space<vmem>>, vector<1x128xf32>
    %56 = vector.broadcast %23 : vector<64x1xf32> to vector<64x128xf32>
    %57 = arith.mulf %42, %56 : vector<64x128xf32>
    %cst_24 = arith.constant dense<0.000000e+00> : vector<128xf32>
    %58 = vector.multi_reduction <add>, %57, %cst_24 [0] : vector<64x128xf32> to vector<128xf32>
    %59 = vector.shape_cast %58 : vector<128xf32> to vector<1x128xf32>
    %60 = arith.addf %55, %59 : vector<1x128xf32>
    %c0_25 = arith.constant 0 : index
    %c0_26 = arith.constant 0 : index
    %61 = vector.load %arg8[%c0_25, %c0_26] : memref<1x128xf32, #tpu.memory_space<vmem>>, vector<1x128xf32>
    tpu.vector_store %arg8[%c0_25, %c0_26], %60 {strides = array<i32>} : memref<1x128xf32, #tpu.memory_space<vmem>>, vector<1x128xf32>,
    %c0_i32_27 = arith.constant 0 : i32
    %62 = arith.cmpi eq, %arg0, %c0_i32_27 : i32
    %63 = arith.extui %62 : i1 to i32
    %c0_i32_28 = arith.constant 0 : i32
    %64 = arith.cmpi ne, %63, %c0_i32_28 : i32
    scf.if %64 {
      %c0_29 = arith.constant 0 : index
      %c0_30 = arith.constant 0 : index
      %65 = vector.load %arg6[%c0_29, %c0_30] : memref<1x128xf32, #tpu.memory_space<vmem>>, vector<1x128xf32>
      %cst_31 = arith.constant 1.000000e+00 : f32
      %66 = vector.broadcast %cst_31 : f32 to vector<1x128xf32>
      %67 = arith.maximumf %65, %66 : vector<1x128xf32>
      %c0_32 = arith.constant 0 : index
      %c0_33 = arith.constant 0 : index
      %68 = vector.load %arg7[%c0_32, %c0_33] : memref<1x128xf32, #tpu.memory_space<vmem>>, vector<1x128xf32>
      %69 = arith.divf %68, %67 : vector<1x128xf32>
      %c0_34 = arith.constant 0 : index
      %c0_35 = arith.constant 0 : index
      %70 = vector.load %arg8[%c0_34, %c0_35] : memref<1x128xf32, #tpu.memory_space<vmem>>, vector<1x128xf32>
      %71 = arith.divf %70, %67 : vector<1x128xf32>
      %cst_36 = arith.constant 6.400000e+01 : f32
      %72 = vector.broadcast %cst_36 : f32 to vector<1x128xf32>
      %73 = arith.divf %65, %72 : vector<1x128xf32>
      %cst_37 = arith.constant 0.000000e+00 : f32
      %74 = vector.broadcast %cst_37 : f32 to vector<1x128xf32>
      %75 = arith.cmpf ogt, %65, %74 : vector<1x128xf32>
      %76 = arith.subf %69, %71 : vector<1x128xf32>
      %77 = math.absf %76 : vector<1x128xf32>
      %78 = arith.mulf %77, %73 : vector<1x128xf32>
      %cst_38 = arith.constant 0.000000e+00 : f32
      %79 = vector.broadcast %cst_38 : f32 to vector<1x128xf32>
      %80 = arith.select %75, %78, %79 : vector<1x128xi1>, vector<1x128xf32>
      %cst_39 = arith.constant dense<0.000000e+00> : vector<1xf32>
      %81 = vector.multi_reduction <add>, %80, %cst_39 [1] : vector<1x128xf32> to vector<1xf32>
      %82 = vector.shape_cast %81 : vector<1xf32> to vector<1x1xf32>
      %c0_40 = arith.constant 0 : index
      %c0_41 = arith.constant 0 : index
      %83 = vector.load %arg5[%c0_40, %c0_41] : memref<1x1xf32, #tpu.memory_space<vmem>>, vector<1x1xf32>
      tpu.vector_store %arg5[%c0_40, %c0_41], %82 {strides = array<i32>} : memref<1x1xf32, #tpu.memory_space<vmem>>, vector<1x1xf32>,
    } else {
    }
    return
  }
  func.func @transform_0(%arg0: i32) -> (i32, i32) {
    %c0_i32 = arith.constant 0 : i32
    %c0_i32_0 = arith.constant 0 : i32
    return %arg0, %c0_i32 : i32, i32
  }
  func.func @transform_1(%arg0: i32) -> (i32, i32) {
    %c0_i32 = arith.constant 0 : i32
    %c0_i32_0 = arith.constant 0 : i32
    return %arg0, %c0_i32 : i32, i32
  }
  func.func @transform_2(%arg0: i32) -> (i32, i32) {
    %c0_i32 = arith.constant 0 : i32
    %c0_i32_0 = arith.constant 0 : i32
    %c0_i32_1 = arith.constant 0 : i32
    return %c0_i32, %c0_i32_0 : i32, i32
  }
  func.func @transform_3(%arg0: i32) -> (i32, i32) {
    %c0_i32 = arith.constant 0 : i32
    %c0_i32_0 = arith.constant 0 : i32
    %c0_i32_1 = arith.constant 0 : i32
    return %c0_i32, %c0_i32_0 : i32, i32
  }
  func.func @transform_4(%arg0: i32) -> (i32, i32) {
    %c0_i32 = arith.constant 0 : i32
    %c0_i32_0 = arith.constant 0 : i32
    %c0_i32_1 = arith.constant 0 : i32
    return %c0_i32, %c0_i32_0 : i32, i32
  }
}

</mosaic_0001>

<bundles_post_ra>
// kernel: ece_pallas.1
= control target key start
LH: loop header
LB: loop body
LE: loop exit
PB: predicated region body
PF: predicated region fallthrough
CT: control target
= control target key end

     0   :  { %vm41_vm0 = vcmask 64512   ;;  %s928_s0 = inlined_call_operand.vmem [shape: f32[64,8], index: 0, kind: input, shape index: {}]   ;;  %s929_s1 = inlined_call_operand.vmem [shape: s32[64,1], index: 1, kind: input, shape index: {}]   ;;  %s930_s2 = inlined_call_operand.vmem [shape: f32[1,128], index: 2, kind: input, shape index: {}]   ;;  %s931_s3 = inlined_call_operand.vmem [shape: f32[1,128], index: 3, kind: input, shape index: {}]   ;;  %s932_s4 = inlined_call_operand.hbm [shape: f32[1,1], index: 4, kind: output, shape index: {}]  }
   0x1   :  { %v655_v0 = vld [vmem:[%s928_s0] sm:$0xff]  ;;  %v660_v1 = vld [vmem:[%s928_s0 + $0x10] sm:$0xff]  ;;  %v665_v2 = vld [vmem:[%s928_s0 + $0x8] sm:$0xff] }
   0x2   :  { %v42_v3 = vsel %vm41_vm0, %v655_v0, -inf  ;;  %v48_v4 = vsel %vm41_vm0, %v660_v1, -inf  ;;  %v674_v5 = vld [vmem:[%s928_s0 + $0x18] sm:$0xff]  ;;  %v45_v6 = vsel %vm41_vm0, %v665_v2, -inf }
   0x3   :  { %43 = vmax.xlane.f32.xlu0 %v42_v3  ;;  %49 = vmax.xlane.f32.xlu1 %v48_v4  ;;  %v51_v7 = vsel %vm41_vm0, %v674_v5, -inf }
   0x4   :  { %9 = vsyncpa [#allocation6], 0  ;;  %v683_v8 = vld [vmem:[%s928_s0 + $0x20] sm:$0xff]  ;;  %v688_v9 = vld [vmem:[%s928_s0 + $0x28] sm:$0xff]  ;;  %v130_v16 = vlaneseq }
   0x5   :  { %v54_v10 = vsel %vm41_vm0, %v683_v8, -inf  ;;  %v57_v11 = vsel %vm41_vm0, %v688_v9, -inf  ;;  %v697_v12 = vld [vmem:[%s928_s0 + $0x30] sm:$0xff]  ;;  %v702_v13 = vld [vmem:[%s928_s0 + $0x38] sm:$0xff] }
   0x6   :  { %v60_v14 = vsel %vm41_vm0, %v697_v12, -inf  ;;  %v63_v15 = vsel %vm41_vm0, %v702_v13, -inf  ;;  %v131_v17 = vand.u32 127, %v130_v16 }
   0x7   :  { %46 = vmax.xlane.f32.xlu0 %v45_v6  ;;  %52 = vmax.xlane.f32.xlu1 %v51_v7 }
   0xb   :  { %55 = vmax.xlane.f32.xlu0 %v54_v10  ;;  %58 = vmax.xlane.f32.xlu1 %v57_v11 }
   0xf   :  { %61 = vmax.xlane.f32.xlu0 %v60_v14  ;;  %64 = vmax.xlane.f32.xlu1 %v63_v15 }
  0x90   :  { %v708_v18 = vpop.xlane.xlu0 %43  ;;  %v710_v19 = vpop.xlane.xlu1 %49 }
  0x91   :  { %vm132_vm1 = vcmp.ge.f32.partialorder %v655_v0, %v708_v18  ;;  %vm134_vm2 = vcmp.ge.f32.partialorder %v660_v1, %v710_v19  ;;  %v66_v59 = vsub.f32 %v655_v0, %v708_v18  ;;  %v68_v63 = vsub.f32 %v660_v1, %v710_v19 }
  0x92   :  { %v140_v20 = vsel %vm132_vm1, %v131_v17, 8  ;;  %v142_v21 = vsel %vm134_vm2, %v131_v17, 8 }
  0x93   :  { %v148_v22 = vsel %vm41_vm0, %v140_v20, 2147483647  ;;  %v178_v26 = vsel %vm41_vm0, %v142_v21, 2147483647  ;;  %v74_v6 = vmul.f32 1.442695, %v66_v59 }
  0x94   :  { %v717_v23 = vpop.xlane.xlu0 %46  ;;  %v719_v24 = vpop.xlane.xlu1 %52  ;;  %v150_v25 = vshra.s32 %v148_v22, 16  ;;  %v180_v30 = vshra.s32 %v178_v26, 16  ;;  %v149_v58 = vand.u32 65535, %v148_v22  ;;  %v179_v62 = vand.u32 65535, %v178_v26 }
  0x95   :  { %vm133_vm3 = vcmp.ge.f32.partialorder %v665_v2, %v717_v23  ;;  %vm135_vm4 = vcmp.ge.f32.partialorder %v674_v5, %v719_v24  ;;  %v67_v7 = vsub.f32 %v665_v2, %v717_v23  ;;  %v78_v0 = vmul.f32 1.442695, %v68_v63 }
  0x96   :  { %v141_v27 = vsel %vm133_vm3, %v131_v17, 8  ;;  %v152_v28 = vcvt.s32.f32 %v150_v25  ;;  %v143_v29 = vsel %vm135_vm4, %v131_v17, 8  ;;  %v182_v36 = vcvt.s32.f32 %v180_v30 }
  0x97   :  { %v163_v33 = vsel %vm41_vm0, %v141_v27, 2147483647  ;;  %v734_v34 = vsel %vm41_vm0, %v143_v29, 2147483647  ;;  %v151_v61 = vcvt.s32.f32 %v149_v58  ;;  %v181_v11 = vcvt.s32.f32 %v179_v62 }
  0x98   :  { %153 = vmin.xlane.f32.xlu0 %v152_v28  ;;  %v726_v31 = vpop.xlane.xlu0 %55  ;;  %v728_v32 = vpop.xlane.xlu1 %58  ;;  %v165_v38 = vshra.s32 %v163_v33, 16  ;;  %v195_v41 = vshra.s32 %v734_v34, 16  ;;  %v164_v4 = vand.u32 65535, %v163_v33  ;;  %v69_v14 = vsub.f32 %v674_v5, %v719_v24 }
  0x99   :  { %vm136_vm5 = vcmp.ge.f32.partialorder %v683_v8, %v726_v31  ;;  %vm137_vm6 = vcmp.ge.f32.partialorder %v688_v9, %v728_v32  ;;  %v70_v15 = vsub.f32 %v683_v8, %v726_v31  ;;  %v194_v18 = vand.u32 65535, %v734_v34 }
  0x9a   :  { %v144_v35 = vsel %vm136_vm5, %v131_v17, 8  ;;  %v145_v37 = vsel %vm137_vm6, %v131_v17, 8  ;;  %v167_v43 = vcvt.s32.f32 %v165_v38  ;;  %v197_v47 = vcvt.s32.f32 %v195_v41 }
  0x9b   :  { %v208_v42 = vsel %vm41_vm0, %v144_v35, 2147483647  ;;  %v747_v44 = vsel %vm41_vm0, %v145_v37, 2147483647  ;;  %566 = vpow2.f32 %v74_v6  ;;  %v76_v19 = vmul.f32 1.442695, %v67_v7 }
  0x9c   :  { %183 = vmin.xlane.f32.xlu0 %v182_v36  ;;  %v738_v39 = vpop.xlane.xlu0 %61  ;;  %v740_v40 = vpop.xlane.xlu1 %64  ;;  %168 = vmin.xlane.f32.xlu1 %v167_v43  ;;  %v210_v48 = vshra.s32 %v208_v42, 16  ;;  %v225_v49 = vshra.s32 %v747_v44, 16  ;;  %v209_v2 = vand.u32 65535, %v208_v42  ;;  %568 = vpow2.f32 %v78_v0 }
  0x9d   :  { %vm138_vm7 = vcmp.ge.f32.partialorder %v697_v12, %v738_v39  ;;  %vm139_vm8 = vcmp.ge.f32.partialorder %v702_v13, %v740_v40  ;;  %v80_v21 = vmul.f32 1.442695, %v69_v14  ;;  %v82_v22 = vmul.f32 1.442695, %v70_v15  ;;  %v35_v15 = vld [vmem:[%s929_s1 + $0x10] sm:$0xff] }
  0x9e   :  { %v146_v45 = vsel %vm138_vm7, %v131_v17, 8  ;;  %v147_v46 = vsel %vm139_vm8, %v131_v17, 8  ;;  %v212_v51 = vcvt.s32.f32 %v210_v48  ;;  %v759_v54 = vcvt.s32.f32 %v225_v49 }
  0x9f   :  { %v753_v50 = vsel %vm41_vm0, %v146_v45, 2147483647  ;;  %v757_v53 = vsel %vm41_vm0, %v147_v46, 2147483647  ;;  %v166_v17 = vcvt.s32.f32 %v164_v4  ;;  %v71_v5 = vsub.f32 %v688_v9, %v728_v32 }
  0xa0   :  { %v240_v52 = vshra.s32 %v753_v50, 16  ;;  %198 = vmin.xlane.f32.xlu1 %v197_v47  ;;  %213 = vmin.xlane.f32.xlu0 %v212_v51  ;;  %v255_v56 = vshra.s32 %v757_v53, 16  ;;  %v196_v24 = vcvt.s32.f32 %v194_v18  ;;  %v211_v25 = vcvt.s32.f32 %v209_v2 }
  0xa1   :  { %v224_v26 = vand.u32 65535, %v747_v44  ;;  %v239_v27 = vand.u32 65535, %v753_v50  ;;  %570 = vpow2.f32 %v76_v19  ;;  %v84_v30 = vmul.f32 1.442695, %v71_v5  ;;  %v34_v19 = vld [vmem:[%s929_s1 + $0x8] sm:$0xff] }
  0xa2   :  { %v761_v55 = vcvt.s32.f32 %v240_v52  ;;  %v766_v57 = vcvt.s32.f32 %v255_v56  ;;  %572 = vpow2.f32 %v80_v21  ;;  %v254_v35 = vand.u32 65535, %v757_v53 }
  0xa3   :  { %574 = vpow2.f32 %v82_v22  ;;  %v226_v33 = vcvt.s32.f32 %v224_v26  ;;  %v241_v34 = vcvt.s32.f32 %v239_v27 }
  0xa4   :  { %228 = vmin.xlane.f32.xlu1 %v759_v54  ;;  %243 = vmin.xlane.f32.xlu0 %v761_v55  ;;  %576 = vpow2.f32 %v84_v30  ;;  %v256_v42 = vcvt.s32.f32 %v254_v35 }
  0xa8   :  { %258 = vmin.xlane.f32.xlu1 %v766_v57 }
 0x125   :  { %v771_v60 = vpop.xlane.xlu0 %153 }
 0x126   :  { %vm155_vm9 = vcmp.eq.f32.partialorder %v152_v28, %v771_v60  ;;  %v72_v28 = vsub.f32 %v697_v12, %v738_v39  ;;  %v567_v39 = vpop.eup %566 }
 0x127   :  { %v156_v3 = vsel %vm155_vm9, %v151_v61, inf  ;;  %v160_v61 = vcvt.f32.s32 %v771_v60  ;;  %v33_v60 = vld [vmem:[%s929_s1] sm:$0xff] }
 0x128   :  { %157 = vmin.xlane.f32.xlu0 %v156_v3  ;;  %v86_v12 = vmul.f32 1.442695, %v72_v28 }
 0x129   :  { %v778_v10 = vpop.xlane.xlu0 %183  ;;  %v785_v16 = vpop.xlane.xlu1 %168  ;;  %v161_v4 = vshll.u32 %v160_v61, 16 }
 0x12a   :  { %vm185_vm10 = vcmp.eq.f32.partialorder %v182_v36, %v778_v10  ;;  %vm170_vm11 = vcmp.eq.f32.partialorder %v167_v43, %v785_v16  ;;  %v73_v36 = vsub.f32 %v702_v13, %v740_v40  ;;  %v569_v43 = vpop.eup %568  ;;  %578 = vpow2.f32 %v86_v12 }
 0x12b   :  { %v186_v1 = vsel %vm185_vm10, %v181_v11, inf  ;;  %v171_v20 = vsel %vm170_vm11, %v166_v17, inf  ;;  %v90_v40 = vsel %vm41_vm0, %v567_v39, 0.0  ;;  %v571_v45 = vpop.eup %570  ;;  %v96_v49 = vsel %vm41_vm0, %v569_v43, 0.0 }
 0x12c   :  { %187 = vmin.xlane.f32.xlu0 %v186_v1  ;;  %172 = vmin.xlane.f32.xlu1 %v171_v20  ;;  %v88_v44 = vmul.f32 1.442695, %v73_v36  ;;  %v573_v46 = vpop.eup %572  ;;  %v93_v48 = vsel %vm41_vm0, %v571_v45, 0.0  ;;  %v190_v63 = vcvt.f32.s32 %v778_v10  ;;  %v175_v6 = vcvt.f32.s32 %v785_v16 }
 0x12d   :  { %v791_v8 = vpop.xlane.xlu1 %198  ;;  %v793_v23 = vpop.xlane.xlu0 %213 }
 0x12e   :  { %vm200_vm12 = vcmp.eq.f32.partialorder %v197_v47, %v791_v8  ;;  %vm215_vm13 = vcmp.eq.f32.partialorder %v212_v51, %v793_v23  ;;  %580 = vpow2.f32 %v88_v44  ;;  %v575_v47 = vpop.eup %574  ;;  %v99_v51 = vsel %vm41_vm0, %v573_v46, 0.0 }
 0x12f   :  { %v201_v9 = vsel %vm200_vm12, %v196_v24, inf  ;;  %v216_v29 = vsel %vm215_vm13, %v211_v25, inf  ;;  %v577_v50 = vpop.eup %576  ;;  %v102_v52 = vsel %vm41_vm0, %v575_v47, 0.0  ;;  %v191_v11 = vshll.u32 %v190_v63, 16 }
 0x130   :  { %202 = vmin.xlane.f32.xlu1 %v201_v9  ;;  %217 = vmin.xlane.f32.xlu0 %v216_v29  ;;  %v105_v56 = vsel %vm41_vm0, %v577_v50, 0.0  ;;  %v205_v1 = vcvt.f32.s32 %v791_v8  ;;  %v220_v17 = vcvt.f32.s32 %v793_v23  ;;  %v176_v2 = vshll.u32 %v175_v6, 16  ;;  %v36_v9 = vld [vmem:[%s929_s1 + $0x18] sm:$0xff]  ;;  %v39_v50 = vld [vmem:[%s929_s1 + $0x30] sm:$0xff] }
 0x131   :  { %v801_v31 = vpop.xlane.xlu1 %228  ;;  %v803_v32 = vpop.xlane.xlu0 %243 }
 0x132   :  { %vm230_vm14 = vcmp.eq.f32.partialorder %v759_v54, %v801_v31  ;;  %vm245_vm15 = vcmp.eq.f32.partialorder %v761_v55, %v803_v32  ;;  %v624_v54 = vmov 0.0   ;;  %v625_v55 = vmov 0  }
 0x133   :  { %v231_v37 = vsel %vm230_vm14, %v226_v33, inf  ;;  %v246_v38 = vsel %vm245_vm15, %v241_v34, inf  ;;  %22 = vst [vmem:[#allocation2] sm:$0x1] %v624_v54  ;;  %23 = vst [vmem:[#allocation3] sm:$0x1] %v624_v54  ;;  %565 = vset.pattern.permute.xlu1 %v625_v55  ;;  %559 = vset.pattern.permute.xlu0 %v625_v55  ;;  %v235_v24 = vcvt.f32.s32 %v801_v31  ;;  %v250_v36 = vcvt.f32.s32 %v803_v32 }
 0x134   :  { %232 = vmin.xlane.f32.xlu1 %v231_v37  ;;  %247 = vmin.xlane.f32.xlu0 %v246_v38  ;;  %v579_v53 = vpop.eup %578  ;;  %24 = vst [vmem:[#allocation4] sm:$0x1] %v624_v54  ;;  %v206_v22 = vshll.u32 %v205_v1, 16  ;;  %v221_v5 = vshll.u32 %v220_v17, 16  ;;  %v37_v31 = vld [vmem:[%s929_s1 + $0x20] sm:$0xff] }
 0x135   :  { %v812_v41 = vpop.xlane.xlu1 %258  ;;  %v236_v12 = vshll.u32 %v235_v24, 16 }
 0x136   :  { %vm260_vm1 = vcmp.eq.f32.partialorder %v766_v57, %v812_v41  ;;  %v108_v57 = vsel %vm41_vm0, %v579_v53, 0.0  ;;  %v265_v45 = vcvt.f32.s32 %v812_v41 }
 0x137   :  { %v261_v13 = vsel %vm260_vm1, %v256_v42, inf }
 0x138   :  { %262 = vmin.xlane.f32.xlu1 %v261_v13  ;;  %91 = vadd.xlane.f32.xlu0 %v90_v40  ;;  %v581_v58 = vpop.eup %580  ;;  %v38_v13 = vld [vmem:[%s929_s1 + $0x28] sm:$0xff]  ;;  %v251_v40 = vshll.u32 %v250_v36, 16 }
 0x139   :  { %v111_v59 = vsel %vm41_vm0, %v581_v58, 0.0  ;;  %v873_v58 = vld [vmem:[%s931_s3] ss:$0 sm:$0xff] }
 0x13c   :  { %94 = vadd.xlane.f32.xlu1 %v93_v48  ;;  %97 = vadd.xlane.f32.xlu0 %v96_v49 }
 0x140   :  { %100 = vadd.xlane.f32.xlu1 %v99_v51  ;;  %103 = vadd.xlane.f32.xlu0 %v102_v52  ;;  %v266_v51 = vshll.u32 %v265_v45, 16 }
 0x144   :  { %106 = vadd.xlane.f32.xlu1 %v105_v56  ;;  %109 = vadd.xlane.f32.xlu0 %v108_v57  ;;  %v40_v56 = vld [vmem:[%s929_s1 + $0x38] sm:$0xff]  ;;  %v868_v57 = vld [vmem:[%s930_s2] ss:$0 sm:$0xff]  ;;  %s626_s1 = smov [#allocation5]  }
 0x145   :  { %s530_s2 = sshll.u32 %s626_s1, 4  ;;  %s531_s2 = int_to_ptr.vmem [resolvable:$true] %s530_s2 }
 0x146   :  { %s600_s3 = scalar_lea.vmem %s531_s2, 16  ;;  %s604_s24 = scalar_lea.vmem %s531_s2, 32 }
 0x147   :  { %p601_p0 = scmp.ne.s32.totalorder %s531_s2, %s600_s3  ;;  %p605_p1 = scmp.lt.s32.totalorder %s531_s2, %s531_s2 }
 0x148   :  { %112 = vadd.xlane.f32.xlu1 %v111_v59  ;;  %p606_p2 = scmp.lt.s32.totalorder %s604_s24, %s600_s3 }
 0x14a   :  { %p607_p3 = por %p606_p2, %p605_p1 }
 0x14c   :  { %p608_p4 = pnand %p607_p3, %p601_p0 }
 0x1b5   :  { %v158_v62 = vpop.xlane.xlu0 %157 }
 0x1b6   :  { %v159_v3 = vcvt.f32.s32 %v158_v62 }
 0x1b8   :  { %v162_v14 = vadd.s32 %v161_v4, %v159_v3 }
 0x1b9   :  { %v188_v7 = vpop.xlane.xlu0 %187  ;;  %v173_v10 = vpop.xlane.xlu1 %172 }
 0x1ba   :  { %v189_v0 = vcvt.f32.s32 %v188_v7  ;;  %v174_v16 = vcvt.f32.s32 %v173_v10  ;;  %vm268_vm2 = vcmp.eq.s32.totalorder %v162_v14, %v33_v60 }
 0x1bb   :  { %v538_v27 = vsel %vm268_vm2, 1.0, %v624_v54 }
 0x1bc   :  { %v192_v18 = vadd.s32 %v191_v11, %v189_v0  ;;  %v177_v20 = vadd.s32 %v176_v2, %v174_v16 }
 0x1bd   :  { %v203_v8 = vpop.xlane.xlu1 %202  ;;  %v218_v23 = vpop.xlane.xlu0 %217 }
 0x1be   :  { %vm270_vm0 = vcmp.eq.s32.totalorder %v192_v18, %v35_v15  ;;  %vm269_vm3 = vcmp.eq.s32.totalorder %v177_v20, %v34_v19  ;;  %v204_v25 = vcvt.f32.s32 %v203_v8  ;;  %v219_v26 = vcvt.f32.s32 %v218_v23 }
 0x1bf   :  { %v540_v21 = vsel %vm270_vm0, 1.0, %v624_v54  ;;  %v539_v28 = vsel %vm269_vm3, 1.0, %v624_v54 }
 0x1c0   :  { %450 = vperm.xlu1 %565, %v540_v21   ;;  %v207_v29 = vadd.s32 %v206_v22, %v204_v25  ;;  %v222_v30 = vadd.s32 %v221_v5, %v219_v26  ;;  %v560_v33 = vpack.i.bf16 %v539_v28, %v538_v27 }
 0x1c1   :  { %v233_v34 = vpop.xlane.xlu1 %232  ;;  %v248_v35 = vpop.xlane.xlu0 %247 }
 0x1c2   :  { %v234_v37 = vcvt.f32.s32 %v233_v34  ;;  %561 = vperm.xlu0 %559, %v560_v33   ;;  %vm271_vm4 = vcmp.eq.s32.totalorder %v207_v29, %v36_v9  ;;  %v249_v42 = vcvt.f32.s32 %v248_v35  ;;  %vm272_vm5 = vcmp.eq.s32.totalorder %v222_v30, %v37_v31 }
 0x1c3   :  { %v541_v38 = vsel %vm271_vm4, 1.0, %v624_v54  ;;  %v542_v32 = vsel %vm272_vm5, 1.0, %v624_v54 }
 0x1c4   :  { %v237_v39 = vadd.s32 %v236_v12, %v234_v37  ;;  %455 = vperm.xlu1 %565, %v541_v38   ;;  %v252_v46 = vadd.s32 %v251_v40, %v249_v42 }
 0x1c5   :  { %v263_v43 = vpop.xlane.xlu1 %262  ;;  %v92_v44 = vpop.xlane.xlu0 %91 }
 0x1c6   :  { %582 = vrcp.f32 %v92_v44  ;;  %v264_v47 = vcvt.f32.s32 %v263_v43  ;;  %vm273_vm6 = vcmp.eq.s32.totalorder %v237_v39, %v38_v13  ;;  %vm274_vm7 = vcmp.eq.s32.totalorder %v252_v46, %v39_v50 }
 0x1c7   :  { %v543_v52 = vsel %vm273_vm6, 1.0, %v624_v54  ;;  %v544_v59 = vsel %vm274_vm7, 1.0, %v624_v54 }
 0x1c8   :  { %460 = vperm.xlu1 %565, %v542_v32   ;;  %v267_v53 = vadd.s32 %v266_v51, %v264_v47  ;;  %v413_v51 = vld [vmem:[#allocation3] sm:$0x1] }
 0x1c9   :  { %v95_v48 = vpop.xlane.xlu1 %94  ;;  %v98_v49 = vpop.xlane.xlu0 %97 }
 0x1ca   :  { %584 = vrcp.f32 %v95_v48  ;;  %vm275_vm8 = vcmp.eq.s32.totalorder %v267_v53, %v40_v56  ;;  %v397_v48 = vld [vmem:[#allocation2] sm:$0x1] }
 0x1cb   :  { %586 = vrcp.f32 %v98_v49  ;;  %v545_v3 = vsel %vm275_vm8, 1.0, %v624_v54 }
 0x1cc   :  { %465 = vperm.xlu1 %565, %v543_v52  }
 0x1cd   :  { %v101_v41 = vpop.xlane.xlu1 %100  ;;  %v104_v55 = vpop.xlane.xlu0 %103 }
 0x1ce   :  { %588 = vrcp.f32 %v101_v41 }
 0x1cf   :  { %590 = vrcp.f32 %v104_v55 }
 0x1d0   :  { %v583_v61 = vpop.eup %582  ;;  %470 = vperm.xlu1 %565, %v544_v59  }
 0x1d1   :  { %v107_v62 = vpop.xlane.xlu1 %106  ;;  %v110_v63 = vpop.xlane.xlu0 %109  ;;  %vm327_vm9 = vcmp.gt.f32.partialorder %v583_v61, %v868_v57  ;;  %vm341_vm10 = vcmp.le.f32.partialorder %v583_v61, %v873_v58 }
 0x1d2   :  { %592 = vrcp.f32 %v107_v62  ;;  %vm349_vm11 = vmand %vm327_vm9, %vm341_vm10 }
 0x1d3   :  { %594 = vrcp.f32 %v110_v63  ;;  %v882_v11 = vsel %vm349_vm11, 1.0, %v624_v54 }
 0x1d4   :  { %v585_v4 = vpop.eup %584  ;;  %475 = vperm.xlu1 %565, %v545_v3   ;;  %v414_v17 = vmul.f32 %v583_v61, %v882_v11 }
 0x1d5   :  { %v587_v6 = vpop.eup %586  ;;  %v113_v7 = vpop.xlane.xlu1 %112  ;;  %vm328_vm12 = vcmp.gt.f32.partialorder %v585_v4, %v868_v57  ;;  %vm342_vm13 = vcmp.le.f32.partialorder %v585_v4, %v873_v58 }
 0x1d6   :  { %596 = vrcp.f32 %v113_v7  ;;  %vm329_vm14 = vcmp.gt.f32.partialorder %v587_v6, %v868_v57  ;;  %vm343_vm15 = vcmp.le.f32.partialorder %v587_v6, %v873_v58  ;;  %vm350_vm1 = vmand %vm328_vm12, %vm342_vm13 }
 0x1d7   :  { %vm351_vm0 = vmand %vm329_vm14, %vm343_vm15  ;;  %v887_v0 = vsel %vm350_vm1, 1.0, %v624_v54 }
 0x1d8   :  { %v589_v14 = vpop.eup %588  ;;  %v890_v15 = vsel %vm351_vm0, 1.0, %v624_v54  ;;  %v398_v1 = vadd.f32 %v887_v0, %v882_v11  ;;  %v415_v60 = vmul.f32 %v585_v4, %v887_v0  ;;  %vm518_vm0 = vcmask 1040384  }
 0x1d9   :  { %v591_v10 = vpop.eup %590  ;;  %v416_v18 = vmul.f32 %v587_v6, %v890_v15  ;;  %vm330_vm2 = vcmp.gt.f32.partialorder %v589_v14, %v868_v57  ;;  %vm344_vm3 = vcmp.le.f32.partialorder %v589_v14, %v873_v58 }
 0x1da   :  { %v422_v2 = vadd.f32 %v415_v60, %v414_v17  ;;  %vm352_vm4 = vmand %vm330_vm2, %vm344_vm3  ;;  %v399_v16 = vadd.f32 %v890_v15, %v398_v1  ;;  %vm331_vm5 = vcmp.gt.f32.partialorder %v591_v10, %v868_v57  ;;  %vm345_vm6 = vcmp.le.f32.partialorder %v591_v10, %v873_v58 }
 0x1db   :  { %v551_v19 = vsel %vm352_vm4, 1.0, %v624_v54  ;;  %vm353_vm7 = vmand %vm331_vm5, %vm345_vm6  ;;  %vm522_vm3 = vcmask 0  }
 0x1dc   :  { %v593_v20 = vpop.eup %592  ;;  %v400_v21 = vadd.f32 %v551_v19, %v399_v16  ;;  %v417_v22 = vmul.f32 %v589_v14, %v551_v19  ;;  %v423_v5 = vadd.f32 %v422_v2, %v416_v18  ;;  %v552_v8 = vsel %vm353_vm7, 1.0, %v624_v54 }
 0x1dd   :  { %v595_v23 = vpop.eup %594  ;;  %v418_v24 = vmul.f32 %v591_v10, %v552_v8  ;;  %vm332_vm8 = vcmp.gt.f32.partialorder %v593_v20, %v868_v57  ;;  %vm346_vm9 = vcmp.le.f32.partialorder %v593_v20, %v873_v58 }
 0x1de   :  { %v424_v25 = vadd.f32 %v423_v5, %v417_v22  ;;  %v401_v26 = vadd.f32 %v552_v8, %v400_v21  ;;  %vm354_vm10 = vmand %vm332_vm8, %vm346_vm9  ;;  %vm333_vm11 = vcmp.gt.f32.partialorder %v595_v23, %v868_v57  ;;  %vm347_vm12 = vcmp.le.f32.partialorder %v595_v23, %v873_v58 }
 0x1df   :  { %v553_v27 = vsel %vm354_vm10, 1.0, %v624_v54  ;;  %vm355_vm13 = vmand %vm333_vm11, %vm347_vm12 }
 0x1e0   :  { %v597_v28 = vpop.eup %596  ;;  %v425_v9 = vadd.f32 %v424_v25, %v418_v24  ;;  %v402_v29 = vadd.f32 %v553_v27, %v401_v26  ;;  %v419_v30 = vmul.f32 %v593_v20, %v553_v27  ;;  %v554_v33 = vsel %vm355_vm13, 1.0, %v624_v54  ;;  %v437_v25 = vld [vmem:[#allocation4] sm:$0x1] }
 0x1e1   :  { %vm334_vm14 = vcmp.gt.f32.partialorder %v597_v28, %v868_v57  ;;  %vm348_vm15 = vcmp.le.f32.partialorder %v597_v28, %v873_v58  ;;  %v420_v31 = vmul.f32 %v595_v23, %v554_v33 }
 0x1e2   :  { %v426_v34 = vadd.f32 %v425_v9, %v419_v30  ;;  %v403_v35 = vadd.f32 %v554_v33, %v402_v29  ;;  %vm356_vm1 = vmand %vm334_vm14, %vm348_vm15 }
 0x1e3   :  { %v555_v12 = vsel %vm356_vm1, 1.0, %v624_v54 }
 0x1e4   :  { %v427_v36 = vadd.f32 %v426_v34, %v420_v31  ;;  %v404_v37 = vadd.f32 %v555_v12, %v403_v35  ;;  %v421_v38 = vmul.f32 %v597_v28, %v555_v12 }
 0x1e6   :  { %v405_v39 = vrot.slane %v404_v37, 4  ;;  %v428_v42 = vadd.f32 %v427_v36, %v421_v38 }
 0x1e8   :  { %v406_v43 = vadd.f32 %v405_v39, %v404_v37  ;;  %v429_v44 = vrot.slane %v428_v42, 4 }
 0x1ea   :  { %v407_v13 = vrot.slane %v406_v43, 2  ;;  %v430_v40 = vadd.f32 %v429_v44, %v428_v42 }
 0x1ec   :  { %v408_v45 = vadd.f32 %v407_v13, %v406_v43  ;;  %v431_v32 = vrot.slane %v430_v40, 2 }
 0x1ee   :  { %v409_v46 = vrot.slane %v408_v45, 1  ;;  %v432_v47 = vadd.f32 %v431_v32, %v430_v40 }
 0x1f0   :  { %v410_v49 = vadd.f32 %v409_v46, %v408_v45  ;;  %v433_v50 = vrot.slane %v432_v47, 1 }
 0x1f2   :  { %v434_v52 = vadd.f32 %v433_v50, %v432_v47  ;;  %v411_v53 = vadd.f32 %v410_v49, %v397_v48 }
 0x1f4   :  { %412 = vst [vmem:[#allocation2] sm:$0x1] %v411_v53  ;;  %v435_v54 = vadd.f32 %v434_v52, %v413_v51 }
 0x1f6   :  { %436 = vst [vmem:[#allocation3] sm:$0x1] %v435_v54 }
 0x1fb   :  { %v504_v5 = vld [vmem:[#allocation2] sm:$0x1] }
 0x1fc   :  { %v505_v23 = vmax.f32 %v504_v5, 1.0  ;;  %v512_v34 = vmul.f32 0.015625, %v504_v5  ;;  %vm513_vm2 = vcmp.gt.f32.partialorder %v504_v5, 0.0 }
 0x1fd   :  { %v506_v28 = vld [vmem:[#allocation3] sm:$0x1] }
 0x1fe   :  { %598 = vrcp.f32 %v505_v23 }
 0x23f   :  { %v451_v41 = vpop.permute.xlu1 %450 }
 0x240   :  { %v480_v62 = vmul.f32 %v890_v15, %v451_v41 }
 0x241   :  { %v562_v55 = vpop.permute.xlu0 %561 }
 0x242   :  { %v564_v56 = vunpack.i.h.bf16 %v562_v55  ;;  %v563_v57 = vunpack.i.l.bf16 %v562_v55 }
 0x243   :  { %v456_v58 = vpop.permute.xlu1 %455 }
 0x244   :  { %v479_v59 = vmul.f32 %v564_v56, %v887_v0  ;;  %v478_v61 = vmul.f32 %v563_v57, %v882_v11  ;;  %v481_v4 = vmul.f32 %v551_v19, %v456_v58 }
 0x246   :  { %v486_v63 = vadd.f32 %v479_v59, %v478_v61 }
 0x247   :  { %v461_v3 = vpop.permute.xlu1 %460 }
 0x248   :  { %v487_v6 = vadd.f32 %v486_v63, %v480_v62  ;;  %v482_v1 = vmul.f32 %v552_v8, %v461_v3 }
 0x24a   :  { %v488_v7 = vadd.f32 %v487_v6, %v481_v4 }
 0x24b   :  { %v466_v14 = vpop.permute.xlu1 %465 }
 0x24c   :  { %v489_v17 = vadd.f32 %v488_v7, %v482_v1  ;;  %v483_v60 = vmul.f32 %v553_v27, %v466_v14  ;;  %v599_v27 = vpop.eup %598 }
 0x24d   :  { %v508_v29 = vmul.f32 %v599_v27, %v506_v28 }
 0x24e   :  { %v490_v2 = vadd.f32 %v489_v17, %v483_v60 }
 0x24f   :  { %v471_v10 = vpop.permute.xlu1 %470 }
 0x250   :  { %v484_v18 = vmul.f32 %v554_v33, %v471_v10 }
 0x252   :  { %v491_v20 = vadd.f32 %v490_v2, %v484_v18 }
 0x253   :  { %v476_v16 = vpop.permute.xlu1 %475 }
 0x254   :  { %v485_v21 = vmul.f32 %v555_v12, %v476_v16 }
 0x256   :  { %v492_v0 = vadd.f32 %v491_v20, %v485_v21 }
 0x258   :  { %v493_v22 = vrot.slane %v492_v0, 4 }
 0x25a   :  { %v494_v11 = vadd.f32 %v493_v22, %v492_v0 }
 0x25c   :  { %v495_v15 = vrot.slane %v494_v11, 2 }
 0x25e   :  { %v496_v24 = vadd.f32 %v495_v15, %v494_v11 }
 0x260   :  { %v497_v19 = vrot.slane %v496_v24, 1 }
 0x262   :  { %v498_v26 = vadd.f32 %v497_v19, %v496_v24 }
 0x264   :  { %v499_v8 = vadd.f32 %v498_v26, %v437_v25 }
 0x266   :  { %500 = vst [vmem:[#allocation4] sm:$0x1] %v499_v8 }
 0x26d   :  { %v509_v9 = vld [vmem:[#allocation4] sm:$0x1] }
 0x26e   :  { %v510_v30 = vmul.f32 %v599_v27, %v509_v9 }
 0x270   :  { %v514_v33 = vsub.f32 %v508_v29, %v510_v30 }
 0x272   :  { %v515_v35 = vand.u32 2147483647, %v514_v33 }
 0x274   :  { %v516_v31 = vmul.f32 %v515_v35, %v512_v34 }
 0x276   :  { %v517_v12 = vsel %vm513_vm2, %v516_v31, 0.0 }
 0x277   :  { %v519_v36 = vsel %vm518_vm0, %v517_v12, 0.0 }
 0x278   :  { %520 = vadd.xlane.f32.xlu1 %v519_v36 }
 0x305   :  { %v521_v37 = vpop.xlane.xlu1 %520 }
 0x306   :  { %523 = vst.msk [vmem:[#allocation5] sm:$0x1] %vm522_vm3, %v521_v37 }
 0x307   :  { %611 = shalt.err (!%p608_p4)
}
 0x308   :  { %s612_s27 = scalar_lea.hbm %s932_s4, 16 }
 0x309   :  { %p613_p5 = scmp.ne.s32.totalorder %s932_s4, %s612_s27  ;;  %p616_p6 = scmp.lt.u32.totalorder %s612_s27, %s932_s4 }
 0x30b   :  { %p618_p7 = pnand %p616_p6, %p613_p5 }
 0x30d   :  { %621 = shalt.err (!%p618_p7)
}
 0x30e   :  { %533 = dma.vmem_to_hbm [thread:$0]  %s531_s2, 16, %s932_s4, [#allocation6]  }
 0x30f   :  { %622 = dma.done.wait [#allocation6], 16  }
 0x310   :  { %623 = vsyncadd [#allocation6], 4294967280 }
 0x311   :  { %537 = vsyncpa [#allocation6], 1 }

</bundles_post_ra>
